<compile_context>
chip_gen: v7x
topology: tpu7x:2x2x1
jax: 0.10.0
libtpu: 0.0.40
codegen_flags: <defaults>
</compile_context>

<pallas_src>
import functools

import jax
import jax.numpy as jnp
import numpy as np
from jax.experimental import pallas as pl
from jax.experimental.pallas import tpu as pltpu


# ----------------------------------------------------------------------------
# Synthetic label-hierarchy construction (mirrors get_label_hierarchy, but
# reads in-memory lines instead of a file).
# ----------------------------------------------------------------------------
def get_label_hierarchy_from_lines(lines):
    tree_labels_path = {}
    tree_paths = set()
    p2t = {}
    for line in lines:
        label, l_path = line.split(',')[:2]
        full_path = l_path.strip()
        p2t[full_path] = int(label)
        path_labels = {}
        for k in range(1, 1 + len(full_path)):
            tree_paths.add(full_path[:k - 1])
            path_labels[full_path[:k - 1]] = int(full_path[k - 1])
        tree_labels_path[int(label)] = path_labels
    # sorted by (len, str) for determinism (reference sorts a set by len only,
    # so absolute path-index order may differ; the script is self-consistent).
    path_inds = {k: i for i, k in enumerate(sorted(tree_paths, key=lambda s: (len(s), s)))}
    labels_hier_idx = {}
    for l, path_dict in tree_labels_path.items():
        items = [(path_inds[p], p_l) for p, p_l in path_dict.items()]
        idx, labs = zip(*items)
        labels_hier_idx[l] = (list(idx), list(labs))
    return labels_hier_idx, len(tree_paths), path_inds, p2t


def build_synthetic_trees(num_labels=8, depth=3, num_trees=2):
    """Build `num_trees` complete binary trees over `num_labels` labels."""
    trees = []
    for m in range(num_trees):
        lines = []
        for lab in range(num_labels):
            perm_lab = (lab * (2 * m + 1) + m) % num_labels
            path = format(perm_lab, '0{}b'.format(depth))
            lines.append(f"{lab},{path}")
        trees.append(get_label_hierarchy_from_lines(lines))
    return trees


def build_combined_tables(trees):
    """Replicates read_trees(): combined (index, path-label) tables per label."""
    num_paths = trees[0][1]
    for t in trees:
        assert t[1] == num_paths
    num_hsfmx = len(trees)
    num_labels = len(trees[0][0])
    depth = len(trees[0][0][0][0])
    idx_table = np.zeros((num_labels, num_hsfmx * depth), dtype=np.int32)
    lab_table = np.zeros((num_labels, num_hsfmx * depth), dtype=np.float32)
    for lab in range(num_labels):
        comb_idx, comb_lab = [], []
        for m, (labels_hier_idx, _, _, _) in enumerate(trees):
            idx, labs = labels_hier_idx[lab]
            comb_idx.extend([i + num_paths * m for i in idx])
            comb_lab.extend([float(v) for v in labs])
        idx_table[lab] = np.array(comb_idx, dtype=np.int32)
        lab_table[lab] = np.array(comb_lab, dtype=np.float32)
    return idx_table, lab_table, num_paths, num_hsfmx


def _ceil_to(x, m):
    return ((x + m - 1) // m) * m


# ----------------------------------------------------------------------------
# Pallas kernel: tiled linear (MXU matmul + bias) + fused per-row path gather.
#   grid = (B/tm, P/tn, D/tk)  -- reduction axis (D) last.
#   acc_ref: f32 VMEM accumulator over the D tiles (init at k==0).
#   The gather accumulates over the P tiles (j axis) directly in the resident
#   lane-dense gather output block, so j must be "arbitrary"; the batch axis
#   is "parallel" (megacore sharding on v7x).
# ----------------------------------------------------------------------------
def _hsfmx_kernel(x_ref, w_ref, b_ref, gidx_ref, out_ref, gath_ref, acc_ref,
                  *, tn, L, L_pad, compute_dtype):
    j = pl.program_id(1)
    k = pl.program_id(2)
    nk = pl.num_programs(2)

    @pl.when(k == 0)
    def _init():
        acc_ref[...] = jnp.zeros_like(acc_ref)

    x = x_ref[...]                                    # [tm, tk]
    w = w_ref[...]                                    # [tn, tk]
    if compute_dtype is not None and x.dtype != compute_dtype:
        x = x.astype(compute_dtype)                   # bf16 operands on v6e/v7x
        w = w.astype(compute_dtype)
    # Contract dim 1 of both operands (== x @ w.T); the MXU handles the
    # transposed operand natively -> no W^T materialization anywhere.
    acc_ref[...] += jax.lax.dot_general(
        x, w, dimension_numbers=(((1,), (1,)), ((), ())),
        preferred_element_type=jnp.float32)

    @pl.when(k == nk - 1)
    def _epilogue():
        out = acc_ref[...] + b_ref[...]               # [tm, tn] f32
        out_ref[...] = out.astype(out_ref.dtype)      # lane-dense (tn=128n) store

        # Per-row path gather for columns that fall in this P tile:
        # one 3-D compare + a single lane reduction (no per-l loop / concat of
        # [tm,1] columns).  Out-of-tile / padded (-1) indices contribute 0.
        idx = gidx_ref[...]                           # [tm, L] global col index
        idx_local = idx - j * tn                      # local to this P tile
        bm = out.shape[0]
        iota_p = jax.lax.broadcasted_iota(jnp.int32, (bm, L, tn), 2)
        onehot = (iota_p == idx_local[:, :, None]).astype(jnp.float32)
        g = jnp.sum(onehot * out[:, None, :], axis=2)         # [tm, L]
        if L_pad > L:                                          # lane-dense slab
            g = jnp.concatenate(
                [g, jnp.zeros((bm, L_pad - L), jnp.float32)], axis=1)

        @pl.when(j == 0)
        def _set():
            gath_ref[...] = g.astype(gath_ref.dtype)

        @pl.when(j > 0)
        def _acc():
            gath_ref[...] += g.astype(gath_ref.dtype)

    # TODO(synk): for very large num_paths, replace the per-tile one-hot
    # compare (O(B*L*P) VPU work) with a scalar-prefetched per-row lane gather
    # via PrefetchScalarGridSpec, and keep idx_table in SMEM.


def hsfmx_forward(x, weight, bias, gather_idx, *, compute_dtype=None,
                  tm=None, tn=128, tk=None):
    """x: [B, D] f32, weight: [P, D] f32, bias: [P] f32, gather_idx: [B, L] i32.

    Returns (output [B, P] f32, gathered [B, L] f32).
    """
    B, D = x.shape
    P, D2 = weight.shape
    assert D == D2
    L = gather_idx.shape[1]

    # Tile sizes (128-aligned lanes; reduction tile fits comfortably in VMEM
    # on all generations incl. v7x's 64 MiB).
    if tm is None:
        tm = min(128, _ceil_to(B, 8))
    if tk is None:
        tk = D if D <= 512 else 512
    L_pad = _ceil_to(max(L, 1), 128)          # lane-dense gather slab width

    Bp = _ceil_to(B, tm)
    Pp = _ceil_to(P, tn)
    Dp = _ceil_to(D, tk)

    # NOTE: in production, pad weight/bias once at parameter-init time so this
    # is a no-op per forward (same spirit as "don't transpose W per call").
    x_p = x if (Bp == B and Dp == D) else jnp.pad(x, ((0, Bp - B), (0, Dp - D)))
    w_p = weight if (Pp == P and Dp == D) else jnp.pad(weight, ((0, Pp - P), (0, Dp - D)))
    b_p = (bias if Pp == P else jnp.pad(bias, (0, Pp - P))).reshape(1, Pp)
    g_i = gather_idx.astype(jnp.int32)
    g_p = g_i if Bp == B else jnp.pad(g_i, ((0, Bp - B), (0, 0)), constant_values=-1)

    nb, nj, nk = Bp // tm, Pp // tn, Dp // tk

    kernel = functools.partial(_hsfmx_kernel, tn=tn, L=L, L_pad=L_pad,
                               compute_dtype=compute_dtype)

    out_p, gath_p = pl.pallas_call(
        kernel,
        out_shape=(jax.ShapeDtypeStruct((Bp, Pp), jnp.float32),
                   jax.ShapeDtypeStruct((Bp, L_pad), jnp.float32)),
        grid_spec=pltpu.PrefetchScalarGridSpec(
            num_scalar_prefetch=0,
            grid=(nb, nj, nk),
            in_specs=[
                pl.BlockSpec((tm, tk), lambda i, j, k: (i, k)),   # x
                pl.BlockSpec((tn, tk), lambda i, j, k: (j, k)),   # weight [P, D]
                pl.BlockSpec((1, tn), lambda i, j, k: (0, j)),    # bias
                pl.BlockSpec((tm, L), lambda i, j, k: (i, 0)),    # gather idx
            ],
            out_specs=(
                pl.BlockSpec((tm, tn), lambda i, j, k: (i, j)),       # output
                pl.BlockSpec((tm, L_pad), lambda i, j, k: (i, 0)),    # gather slab
            ),
            scratch_shapes=[pltpu.VMEM((tm, tn), jnp.float32)],
        ),
        compiler_params=pltpu.CompilerParams(
            dimension_semantics=("parallel", "arbitrary", "arbitrary"),
            vmem_limit_bytes=32 * 1024 * 1024),
    )(x_p, w_p, b_p, g_p)

    return out_p[:B, :P], gath_p[:B, :L]


# ----------------------------------------------------------------------------
# Module-level wrapper reproducing HierarchicalSoftmaxEnsemble.forward
# (collect_paths=True path).
# ----------------------------------------------------------------------------
def hierarchical_softmax_ensemble_forward(x, target, weight, bias,
                                          idx_table, lab_table,
                                          compute_dtype=None):
    # TODO(synk): the idx_table lookup could be fused into the kernel via
    # scalar prefetch (target in SMEM); kept as a tiny XLA gather here.
    gather_idx = jnp.take(idx_table, target, axis=0)          # [B, L]
    target_hsfmx = jnp.take(lab_table, target, axis=0).reshape(-1)

    output, gath = hsfmx_forward(x, weight, bias, gather_idx,
                                 compute_dtype=compute_dtype)
    output_hsfmx = gath.reshape(-1)                           # cat over rows
    return output_hsfmx, target_hsfmx, output
    # TODO(synk): get_labels / pred_label_single_hsfmx is a data-dependent
    # sequential per-row tree walk (host-side Python in the reference); not
    # implemented as a TPU kernel.


if __name__ == "__main__":
    # synthetic hierarchy: 8 labels, depth-3 complete binary trees, 2 trees
    NUM_LABELS, DEPTH, NUM_TREES = 8, 3, 2
    trees = build_synthetic_trees(NUM_LABELS, DEPTH, NUM_TREES)
    idx_table_np, lab_table_np, num_paths, num_hsfmx = build_combined_tables(trees)
    idx_table = jnp.asarray(idx_table_np)     # [num_labels, num_hsfmx*depth]
    lab_table = jnp.asarray(lab_table_np)

    key = jax.random.PRNGKey(0)
    kx, kw, kb, kt, k2x, k2w, k2b, k2g = jax.random.split(key, 8)

    # ------------------ Test 1: tree-backed forward, f32 MXU ------------------
    B, D = 8, 32
    P = num_paths * num_hsfmx                 # 7 * 2 = 14 output logits
    x = jax.random.normal(kx, (B, D), dtype=jnp.float32)
    bound = 1.0 / np.sqrt(D)
    weight = jax.random.uniform(kw, (P, D), minval=-bound, maxval=bound,
                                dtype=jnp.float32)
    bias = jax.random.uniform(kb, (P,), minval=-bound, maxval=bound,
                              dtype=jnp.float32)
    target = jax.random.randint(kt, (B,), 0, NUM_LABELS)

    output_hsfmx, target_hsfmx, output = hierarchical_softmax_ensemble_forward(
        x, target, weight, bias, idx_table, lab_table, compute_dtype=None)
    jax.block_until_ready((output_hsfmx, target_hsfmx, output))

    xn = np.asarray(x, dtype=np.float64)
    wn = np.asarray(weight, dtype=np.float64)
    bn = np.asarray(bias, dtype=np.float64)
    ref_out = xn @ wn.T + bn
    gidx_np = np.asarray(jnp.take(idx_table, target, axis=0))
    ref_gath = np.take_along_axis(ref_out, gidx_np, axis=1).reshape(-1)
    ref_tgt = lab_table_np[np.asarray(target)].reshape(-1)
    np.testing.assert_allclose(np.asarray(output), ref_out, rtol=1e-4, atol=1e-4)
    np.testing.assert_allclose(np.asarray(output_hsfmx), ref_gath,
                               rtol=1e-4, atol=1e-4)
    np.testing.assert_allclose(np.asarray(target_hsfmx), ref_tgt,
                               rtol=1e-6, atol=1e-6)

    # ---- Test 2: multi-tile grid (nb=nj=nk=2) + bf16 MXU operands ------------
    B2, D2, P2, L2 = 96, 256, 200, 6
    x2 = jax.random.normal(k2x, (B2, D2), dtype=jnp.float32)
    bound2 = 1.0 / np.sqrt(D2)
    w2 = jax.random.uniform(k2w, (P2, D2), minval=-bound2, maxval=bound2,
                            dtype=jnp.float32)
    b2 = jax.random.uniform(k2b, (P2,), minval=-bound2, maxval=bound2,
                            dtype=jnp.float32)
    gidx2 = jax.random.randint(k2g, (B2, L2), 0, P2)

    out2, gath2 = hsfmx_forward(x2, w2, b2, gidx2, compute_dtype=jnp.bfloat16,
                                tm=64, tn=128, tk=128)
    jax.block_until_ready((out2, gath2))

    x2b = np.asarray(x2.astype(jnp.bfloat16)).astype(np.float64)
    w2b = np.asarray(w2.astype(jnp.bfloat16)).astype(np.float64)
    ref2 = x2b @ w2b.T + np.asarray(b2, dtype=np.float64)
    ref2_gath = np.take_along_axis(ref2, np.asarray(gidx2), axis=1)
    np.testing.assert_allclose(np.asarray(out2), ref2, rtol=2e-3, atol=2e-3)
    np.testing.assert_allclose(np.asarray(gath2), ref2_gath, rtol=2e-3, atol=2e-3)

    print("KERNEL_OK")
</pallas_src>

<mosaic_0001>
module attributes {stable_mosaic.version = 11 : i64} {
  func.func @_hsfmx_kernel(%arg0: i32, %arg1: i32, %arg2: i32, %arg3: memref<8x32xf32, #tpu.memory_space<vmem>>, %arg4: memref<128x32xf32, #tpu.memory_space<vmem>>, %arg5: memref<1x128xf32, #tpu.memory_space<vmem>>, %arg6: memref<8x6xi32, #tpu.memory_space<vmem>>, %arg7: memref<8x128xf32, #tpu.memory_space<vmem>>, %arg8: memref<8x128xf32, #tpu.memory_space<vmem>>, %arg9: memref<8x128xf32, #tpu.memory_space<vmem>>) attributes {dimension_semantics = [#tpu.dimension_semantics<parallel>, #tpu.dimension_semantics<arbitrary>, #tpu.dimension_semantics<arbitrary>], iteration_bounds = array<i64: 1, 1, 1>, scalar_prefetch = 0 : i64, scratch_operands = 1 : i64, tpu.core_type = #tpu.core_type<tc>, window_params = [{transform_indices = @transform_0, window_bounds = array<i64: 8, 32>}, {transform_indices = @transform_1, window_bounds = array<i64: 128, 32>}, {transform_indices = @transform_2, window_bounds = array<i64: 1, 128>}, {transform_indices = @transform_3, window_bounds = array<i64: 8, 6>}, {transform_indices = @transform_4, window_bounds = array<i64: 8, 128>}, {transform_indices = @transform_5, window_bounds = array<i64: 8, 128>}]} {
    %c0_i32 = arith.constant 0 : i32
    %0 = arith.cmpi eq, %arg2, %c0_i32 : i32
    %1 = arith.extui %0 : i1 to i32
    %c0_i32_0 = arith.constant 0 : i32
    %2 = arith.cmpi ne, %1, %c0_i32_0 : i32
    scf.if %2 {
      %cst_10 = arith.constant 0.000000e+00 : f32
      %12 = vector.broadcast %cst_10 : f32 to vector<8x128xf32>
      %c0_11 = arith.constant 0 : index
      %c0_12 = arith.constant 0 : index
      %13 = vector.load %arg9[%c0_11, %c0_12] : memref<8x128xf32, #tpu.memory_space<vmem>>, vector<8x128xf32>
      tpu.vector_store %arg9[%c0_11, %c0_12], %12 {strides = array<i32>} : memref<8x128xf32, #tpu.memory_space<vmem>>, vector<8x128xf32>,
    } else {
    }
    %c0 = arith.constant 0 : index
    %c0_1 = arith.constant 0 : index
    %3 = vector.load %arg3[%c0, %c0_1] : memref<8x32xf32, #tpu.memory_space<vmem>>, vector<8x32xf32>
    %c0_2 = arith.constant 0 : index
    %c0_3 = arith.constant 0 : index
    %4 = vector.load %arg4[%c0_2, %c0_3] : memref<128x32xf32, #tpu.memory_space<vmem>>, vector<128x32xf32>
    %c0_4 = arith.constant 0 : index
    %c0_5 = arith.constant 0 : index
    %5 = vector.load %arg9[%c0_4, %c0_5] : memref<8x128xf32, #tpu.memory_space<vmem>>, vector<8x128xf32>
    %cst = arith.constant dense<0.000000e+00> : vector<8x128xf32>
    %6 = tpu.matmul %3, %4, %cst {dimension_numbers = #tpu.dot_dimension_numbers<[1], [1], [0], [0], [0, 0, 1, 0], [], []>} : vector<8x32xf32>, vector<128x32xf32>, vector<8x128xf32> -> vector<8x128xf32>
    %7 = arith.addf %5, %6 : vector<8x128xf32>
    %c0_6 = arith.constant 0 : index
    %c0_7 = arith.constant 0 : index
    %8 = vector.load %arg9[%c0_6, %c0_7] : memref<8x128xf32, #tpu.memory_space<vmem>>, vector<8x128xf32>
    tpu.vector_store %arg9[%c0_6, %c0_7], %7 {strides = array<i32>} : memref<8x128xf32, #tpu.memory_space<vmem>>, vector<8x128xf32>,
    %c0_i32_8 = arith.constant 0 : i32
    %9 = arith.cmpi eq, %arg2, %c0_i32_8 : i32
    %10 = arith.extui %9 : i1 to i32
    %c0_i32_9 = arith.constant 0 : i32
    %11 = arith.cmpi ne, %10, %c0_i32_9 : i32
    scf.if %11 {
      %c0_10 = arith.constant 0 : index
      %c0_11 = arith.constant 0 : index
      %12 = vector.load %arg9[%c0_10, %c0_11] : memref<8x128xf32, #tpu.memory_space<vmem>>, vector<8x128xf32>
      %c0_12 = arith.constant 0 : index
      %c0_13 = arith.constant 0 : index
      %13 = vector.load %arg5[%c0_12, %c0_13] : memref<1x128xf32, #tpu.memory_space<vmem>>, vector<1x128xf32>
      %14 = vector.broadcast %13 : vector<1x128xf32> to vector<8x128xf32>
      %15 = arith.addf %12, %14 : vector<8x128xf32>
      %c0_14 = arith.constant 0 : index
      %c0_15 = arith.constant 0 : index
      %16 = vector.load %arg7[%c0_14, %c0_15] : memref<8x128xf32, #tpu.memory_space<vmem>>, vector<8x128xf32>
      tpu.vector_store %arg7[%c0_14, %c0_15], %15 {strides = array<i32>} : memref<8x128xf32, #tpu.memory_space<vmem>>, vector<8x128xf32>,
      %c0_16 = arith.constant 0 : index
      %c0_17 = arith.constant 0 : index
      %17 = vector.load %arg6[%c0_16, %c0_17] : memref<8x6xi32, #tpu.memory_space<vmem>>, vector<8x6xi32>
      %c128_i32 = arith.constant 128 : i32
      %18 = arith.muli %arg1, %c128_i32 : i32
      %19 = vector.broadcast %18 : i32 to vector<8x6xi32>
      %20 = arith.subi %17, %19 : vector<8x6xi32>
      %21 = tpu.iota {dimensions = array<i32: 2>} : vector<8x6x128xi32>
      %22 = vector.shape_cast %20 : vector<8x6xi32> to vector<8x6x1xi32>
      %23 = vector.broadcast %22 : vector<8x6x1xi32> to vector<8x6x128xi32>
      %24 = arith.cmpi eq, %21, %23 : vector<8x6x128xi32>
      %25 = arith.extui %24 : vector<8x6x128xi1> to vector<8x6x128xi32>
      %26 = arith.sitofp %25 : vector<8x6x128xi32> to vector<8x6x128xf32>
      %27 = vector.shape_cast %15 : vector<8x128xf32> to vector<8x1x128xf32>
      %28 = vector.broadcast %27 : vector<8x1x128xf32> to vector<8x6x128xf32>
      %29 = arith.mulf %26, %28 : vector<8x6x128xf32>
      %cst_18 = arith.constant dense<0.000000e+00> : vector<8x6xf32>
      %30 = vector.multi_reduction <add>, %29, %cst_18 [2] : vector<8x6x128xf32> to vector<8x6xf32>
      %cst_19 = arith.constant 0.000000e+00 : f32
      %31 = vector.broadcast %cst_19 : f32 to vector<8x122xf32>
      %32 = tpu.concatenate %30, %31 in 1 : vector<8x6xf32>, vector<8x122xf32> -> vector<8x128xf32>
      %c0_i32_20 = arith.constant 0 : i32
      %33 = arith.cmpi eq, %arg1, %c0_i32_20 : i32
      %34 = arith.extui %33 : i1 to i32
      %c0_i32_21 = arith.constant 0 : i32
      %35 = arith.cmpi ne, %34, %c0_i32_21 : i32
      scf.if %35 {
        %c0_24 = arith.constant 0 : index
        %c0_25 = arith.constant 0 : index
        %39 = vector.load %arg8[%c0_24, %c0_25] : memref<8x128xf32, #tpu.memory_space<vmem>>, vector<8x128xf32>
        tpu.vector_store %arg8[%c0_24, %c0_25], %32 {strides = array<i32>} : memref<8x128xf32, #tpu.memory_space<vmem>>, vector<8x128xf32>,
      } else {
      }
      %c0_i32_22 = arith.constant 0 : i32
      %36 = arith.cmpi sgt, %arg1, %c0_i32_22 : i32
      %37 = arith.extui %36 : i1 to i32
      %c0_i32_23 = arith.constant 0 : i32
      %38 = arith.cmpi ne, %37, %c0_i32_23 : i32
      scf.if %38 {
        %c0_24 = arith.constant 0 : index
        %c0_25 = arith.constant 0 : index
        %39 = vector.load %arg8[%c0_24, %c0_25] : memref<8x128xf32, #tpu.memory_space<vmem>>, vector<8x128xf32>
        %40 = arith.addf %39, %32 : vector<8x128xf32>
        %c0_26 = arith.constant 0 : index
        %c0_27 = arith.constant 0 : index
        %41 = vector.load %arg8[%c0_26, %c0_27] : memref<8x128xf32, #tpu.memory_space<vmem>>, vector<8x128xf32>
        tpu.vector_store %arg8[%c0_26, %c0_27], %40 {strides = array<i32>} : memref<8x128xf32, #tpu.memory_space<vmem>>, vector<8x128xf32>,
      } else {
      }
    } else {
    }
    return
  }
  func.func @transform_0(%arg0: i32, %arg1: i32, %arg2: i32) -> (i32, i32) {
    %c0_i32 = arith.constant 0 : i32
    return %arg0, %arg2 : i32, i32
  }
  func.func @transform_1(%arg0: i32, %arg1: i32, %arg2: i32) -> (i32, i32) {
    %c0_i32 = arith.constant 0 : i32
    return %arg1, %arg2 : i32, i32
  }
  func.func @transform_2(%arg0: i32, %arg1: i32, %arg2: i32) -> (i32, i32) {
    %c0_i32 = arith.constant 0 : i32
    %c0_i32_0 = arith.constant 0 : i32
    return %c0_i32, %arg1 : i32, i32
  }
  func.func @transform_3(%arg0: i32, %arg1: i32, %arg2: i32) -> (i32, i32) {
    %c0_i32 = arith.constant 0 : i32
    %c0_i32_0 = arith.constant 0 : i32
    return %arg0, %c0_i32 : i32, i32
  }
  func.func @transform_4(%arg0: i32, %arg1: i32, %arg2: i32) -> (i32, i32) {
    %c0_i32 = arith.constant 0 : i32
    return %arg0, %arg1 : i32, i32
  }
  func.func @transform_5(%arg0: i32, %arg1: i32, %arg2: i32) -> (i32, i32) {
    %c0_i32 = arith.constant 0 : i32
    %c0_i32_0 = arith.constant 0 : i32
    return %arg0, %c0_i32 : i32, i32
  }
}

</mosaic_0001>

<bundles_post_ra>
// kernel: tpu_custom_call.1
= control target key start
LH: loop header
LB: loop body
LE: loop exit
PB: predicated region body
PF: predicated region fallthrough
CT: control target
= control target key end

     0   :  { %11 = vsyncpa [#allocation4], 0  ;;  %vm44_vm0 = vcmask 261120   ;;  %v185_v2 = vlaneseq  ;;  %v651_v3 = vmov 0.0|0.0   ;;  %vm652_vm2 = vmmov 0   ;;  %s852_s0 = inlined_call_operand.vmem [shape: f32[8,32], index: 0, kind: input, shape index: {}]   ;;  %s853_s1 = inlined_call_operand.vmem [shape: f32[128,32], index: 1, kind: input, shape index: {}]   ;;  %s854_s2 = inlined_call_operand.vmem [shape: f32[1,128], index: 2, kind: input, shape index: {}]   ;;  %s855_s3 = inlined_call_operand.vmem [shape: s32[8,6], index: 3, kind: input, shape index: {}]   ;;  %s856_s4 = inlined_call_operand.hbm [shape: f32[8,128], index: 4, kind: output, shape index: {0}]   ;;  %s857_s5 = inlined_call_operand.hbm [shape: f32[8,128], index: 5, kind: output, shape index: {1}]  }
   0x1   :  { %v27_v0 = vld [vmem:[%s853_s1] sm:$0xff]  ;;  %v28_v1 = vld [vmem:[%s853_s1 + $0x8] sm:$0xff]  ;;  %565 = vmatprep.subr.bf16.mxu0 %v651_v3  ;;  %vm696_vm1 = vmpackc.low %vm44_vm0, %vm44_vm0  ;;  %v653_v6 = vmov 0.0  }
   0x2   :  { %v566_v4 = vpack.c.bf16 %v28_v1, %v27_v0  ;;  %562 = vmatprep.mubr.msk.f32.mxu0 %vm652_vm2, %v653_v6  ;;  %v702_v7 = vshrl.u32 %v185_v2, 7  ;;  %v29_v8 = vld [vmem:[%s853_s1 + $0x10] sm:$0xff]  ;;  %v30_v9 = vld [vmem:[%s853_s1 + $0x18] sm:$0xff]  ;;  %v181_v14 = vld [vmem:[%s855_s3] sm:$0xff] }
   0x4   :  { %568 = vmatpush3.bf16.xpose.msk.msra.mxu0 %vm696_vm1, %v566_v4  ;;  %v714_v10 = vsub.s32 0, %v702_v7  ;;  %v203_v11 = vsub.s32 2, %v702_v7  ;;  %v196_v12 = vsub.s32 1, %v702_v7  ;;  %v210_v13 = vsub.s32 3, %v702_v7 }
   0x5   :  { %569 = vmatprep.subr.bf16.mxu0 %v651_v3 }
   0x6   :  { %12 = vsyncpa [#allocation6], 0  ;;  %v570_v15 = vpack.c.bf16 %v30_v9, %v29_v8  ;;  %v190_v16 = vrot.slane %v181_v14, %v714_v10  ;;  %v204_v17 = vrot.slane %v181_v14, %v203_v11  ;;  %v197_v18 = vrot.slane %v181_v14, %v196_v12  ;;  %v31_v22 = vld [vmem:[%s853_s1 + $0x20] sm:$0xff]  ;;  %v32_v23 = vld [vmem:[%s853_s1 + $0x28] sm:$0xff] }
   0x7   :  { %v211_v19 = vrot.slane %v181_v14, %v210_v13  ;;  %v217_v20 = vsub.s32 4, %v702_v7  ;;  %v224_v21 = vsub.s32 5, %v702_v7  ;;  %v231_v26 = vsub.s32 6, %v702_v7  ;;  %v33_v31 = vld [vmem:[%s853_s1 + $0x30] sm:$0xff]  ;;  %v34_v32 = vld [vmem:[%s853_s1 + $0x38] sm:$0xff]  ;;  %v35_v34 = vld [vmem:[%s853_s1 + $0x40] sm:$0xff] }
   0x8   :  { %192 = vbcast.lane.b32.xlu0 %v190_v16, 256  ;;  %206 = vbcast.lane.b32.xlu1 %v204_v17, 256  ;;  %v238_v27 = vsub.s32 7, %v702_v7  ;;  %v574_v28 = vpack.c.bf16 %v32_v23, %v31_v22  ;;  %v578_v33 = vpack.c.bf16 %v34_v32, %v33_v31  ;;  %v36_v35 = vld [vmem:[%s853_s1 + $0x48] sm:$0xff]  ;;  %v37_v37 = vld [vmem:[%s853_s1 + $0x50] sm:$0xff]  ;;  %v38_v38 = vld [vmem:[%s853_s1 + $0x58] sm:$0xff] }
   0x9   :  { %v218_v24 = vrot.slane %v181_v14, %v217_v20  ;;  %v225_v25 = vrot.slane %v181_v14, %v224_v21  ;;  %v232_v29 = vrot.slane %v181_v14, %v231_v26  ;;  %v582_v36 = vpack.c.bf16 %v36_v35, %v35_v34  ;;  %v39_v40 = vld [vmem:[%s853_s1 + $0x60] sm:$0xff]  ;;  %v40_v41 = vld [vmem:[%s853_s1 + $0x68] sm:$0xff]  ;;  %v41_v43 = vld [vmem:[%s853_s1 + $0x70] sm:$0xff] }
   0xa   :  { %v239_v30 = vrot.slane %v181_v14, %v238_v27  ;;  %v586_v39 = vpack.c.bf16 %v38_v38, %v37_v37  ;;  %v590_v42 = vpack.c.bf16 %v40_v41, %v39_v40  ;;  %v42_v44 = vld [vmem:[%s853_s1 + $0x78] sm:$0xff]  ;;  %v26_v46 = vld [vmem:[%s852_s0] sm:$0xff]  ;;  %v654_v50 = vmov 1966171168   ;;  %s655_s0 = smov [#allocation3]  }
   0xb   :  { %v594_v45 = vpack.c.bf16 %v42_v44, %v41_v43  ;;  %v270_v51 = vunpack.c.l.s4 %v654_v50  ;;  %v788_v55 = vand.u32 127, %v185_v2  ;;  %v504_v56 = vld [vmem:[%s854_s2] ss:$0 sm:$0xff]  ;;  %vm365_vm10 = vcmask 1045504   ;;  %s465_s2 = sshll.u32 %s655_s0, 4  ;;  %s466_s2 = int_to_ptr.vmem [resolvable:$true] %s465_s2 }
   0xc   :  { %572 = vmatpush3.bf16.xpose.msk.msra.mxu0 %vm696_vm1, %v570_v15  ;;  %199 = vbcast.lane.b32.xlu0 %v197_v18, 256  ;;  %s603_s3 = scalar_lea.vmem %s466_s2, 128  ;;  %p608_p1 = scmp.lt.s32.totalorder %s466_s2, %s466_s2 }
   0xd   :  { %573 = vmatprep.subr.bf16.mxu0 %v651_v3  ;;  %213 = vbcast.lane.b32.xlu1 %v211_v19, 256  ;;  %v271_v52 = vunpack.c.0.s8 %v270_v51  ;;  %p604_p0 = scmp.ne.s32.totalorder %s466_s2, %s603_s3  ;;  %p609_p2 = scmp.lt.s32.totalorder %s603_s3, %s603_s3 }
   0xf   :  { %v274_v57 = vsub.s32 %v271_v52, %v702_v7  ;;  %p610_p3 = por %p609_p2, %p608_p1 }
  0x10   :  { %220 = vbcast.lane.b32.xlu0 %v218_v24, 256 }
  0x11   :  { %227 = vbcast.lane.b32.xlu1 %v225_v25, 256  ;;  %p611_p4 = pnand %p610_p3, %p604_p0 }
  0x14   :  { %576 = vmatpush3.bf16.xpose.msk.msra.mxu0 %vm696_vm1, %v574_v28  ;;  %234 = vbcast.lane.b32.xlu0 %v232_v29, 256 }
  0x15   :  { %577 = vmatprep.subr.bf16.mxu0 %v651_v3  ;;  %241 = vbcast.lane.b32.xlu1 %v239_v30, 256 }
  0x1c   :  { %580 = vmatpush3.bf16.xpose.msk.msra.mxu0 %vm696_vm1, %v578_v33 }
  0x1d   :  { %581 = vmatprep.subr.bf16.mxu0 %v651_v3 }
  0x24   :  { %584 = vmatpush3.bf16.xpose.msk.msra.mxu0 %vm696_vm1, %v582_v36 }
  0x25   :  { %585 = vmatprep.subr.bf16.mxu0 %v651_v3 }
  0x2c   :  { %588 = vmatpush3.bf16.xpose.msk.msra.mxu0 %vm696_vm1, %v586_v39 }
  0x2d   :  { %589 = vmatprep.subr.bf16.mxu0 %v651_v3 }
  0x34   :  { %592 = vmatpush3.bf16.xpose.msk.msra.mxu0 %vm696_vm1, %v590_v42 }
  0x35   :  { %593 = vmatprep.subr.bf16.mxu0 %v651_v3 }
  0x3c   :  { %596 = vmatpush3.bf16.xpose.msk.msra.mxu0 %vm696_vm1, %v594_v45 }
  0x43   :  { %563 = vmatmul.mubr.msk.f32.vlgmr.msra.gmra.mrb[0].mxu0 %vm44_vm0, %v26_v46 }
  0x7a   :  { %v193_v47 = vpop.permute.xlu0 %192  ;;  %v207_v48 = vpop.permute.xlu1 %206 }
  0x7b   :  { %vm243_vm3 = vcmp.eq.s32.totalorder %v788_v55, %v193_v47  ;;  %vm245_vm4 = vcmp.eq.s32.totalorder %v788_v55, %v207_v48 }
  0x7c   :  { %v505_v1 = vsel %vm243_vm3, 1.0, %v653_v6  ;;  %v507_v5 = vsel %vm245_vm4, 1.0, %v653_v6 }
  0x7e   :  { %v200_v49 = vpop.permute.xlu0 %199 }
  0x7f   :  { %v214_v53 = vpop.permute.xlu1 %213  ;;  %vm244_vm5 = vcmp.eq.s32.totalorder %v788_v55, %v200_v49 }
  0x80   :  { %vm246_vm6 = vcmp.eq.s32.totalorder %v788_v55, %v214_v53  ;;  %v506_v8 = vsel %vm244_vm5, 1.0, %v653_v6 }
  0x81   :  { %v508_v9 = vsel %vm246_vm6, 1.0, %v653_v6 }
  0x82   :  { %v221_v54 = vpop.permute.xlu0 %220 }
  0x83   :  { %v228_v61 = vpop.permute.xlu1 %227  ;;  %vm247_vm7 = vcmp.eq.s32.totalorder %v788_v55, %v221_v54 }
  0x84   :  { %vm248_vm8 = vcmp.eq.s32.totalorder %v788_v55, %v228_v61  ;;  %v509_v11 = vsel %vm247_vm7, 1.0, %v653_v6 }
  0x85   :  { %v510_v17 = vsel %vm248_vm8, 1.0, %v653_v6 }
  0x86   :  { %v235_v62 = vpop.permute.xlu0 %234 }
  0x87   :  { %vm249_vm9 = vcmp.eq.s32.totalorder %v788_v55, %v235_v62  ;;  %v242_v12 = vpop.permute.xlu1 %241 }
  0x88   :  { %v511_v18 = vsel %vm249_vm9, 1.0, %v653_v6  ;;  %vm250_vm11 = vcmp.eq.s32.totalorder %v788_v55, %v242_v12 }
  0x89   :  { %v512_v35 = vsel %vm250_vm11, 1.0, %v653_v6 }
 0x116   :  { %v162_v58 = vpop.f32.mrb[0].mxu0 }
 0x117   :  { %v179_v59 = vadd.f32 %v504_v56, %v162_v58  ;;  %v564_v60 = vpop.f32.mrb[1].mxu0 }
 0x119   :  { %v268_v63 = vcombine.high %v179_v59, %v179_v59  ;;  %v275_v0 = vrot.slane %v179_v59, %v274_v57  ;;  %180 = vst [vmem:[#allocation3] sm:$0xff] %v179_v59 }
 0x11b   :  { %v282_v2 = vrot.slane %v268_v63, %v274_v57  ;;  %v283_v3 = vcombine.high %v275_v0, %v275_v0  ;;  %v291_v4 = vrot.slane %v275_v0, %v274_v57 }
 0x11d   :  { %v320_v13 = vrot.slane %v291_v4, %v714_v10  ;;  %v305_v14 = vrot.slane %v283_v3, %v274_v57  ;;  %v313_v15 = vcombine.high %v291_v4, %v291_v4  ;;  %v298_v16 = vrot.slane %v282_v2, %v274_v57 }
 0x11e   :  { %v284_v19 = vcombine.high %v282_v2, %v282_v2 }
 0x11f   :  { %v357_v20 = vmul.f32 %v505_v1, %v320_v13  ;;  %v324_v21 = vrot.slane %v305_v14, %v714_v10  ;;  %v328_v22 = vrot.slane %v313_v15, %v714_v10  ;;  %v336_v23 = vrot.slane %v298_v16, %v714_v10 }
 0x120   :  { %v315_v24 = vcombine.high %v305_v14, %v305_v14  ;;  %v314_v25 = vcombine.high %v298_v16, %v298_v16  ;;  %v312_v26 = vrot.slane %v284_v19, %v274_v57 }
 0x121   :  { %v366_v27 = vsel %vm365_vm10, %v357_v20, 0.0  ;;  %v358_v28 = vmul.f32 %v506_v8, %v324_v21  ;;  %v359_v29 = vmul.f32 %v507_v5, %v328_v22  ;;  %v361_v30 = vmul.f32 %v509_v11, %v336_v23 }
 0x122   :  { %367 = vadd.xlane.f32.xlu0 %v366_v27  ;;  %v332_v31 = vrot.slane %v315_v24, %v714_v10  ;;  %v344_v32 = vrot.slane %v314_v25, %v714_v10  ;;  %v340_v33 = vrot.slane %v312_v26, %v714_v10  ;;  %v316_v34 = vcombine.high %v312_v26, %v312_v26 }
 0x123   :  { %v369_v36 = vsel %vm365_vm10, %v358_v28, 0.0  ;;  %v372_v41 = vsel %vm365_vm10, %v359_v29, 0.0  ;;  %v378_v43 = vsel %vm365_vm10, %v361_v30, 0.0 }
 0x124   :  { %370 = vadd.xlane.f32.xlu1 %v369_v36  ;;  %v360_v37 = vmul.f32 %v508_v9, %v332_v31  ;;  %v363_v38 = vmul.f32 %v511_v18, %v344_v32  ;;  %v362_v39 = vmul.f32 %v510_v17, %v340_v33  ;;  %v348_v40 = vrot.slane %v316_v34, %v714_v10 }
 0x126   :  { %373 = vadd.xlane.f32.xlu0 %v372_v41  ;;  %v364_v42 = vmul.f32 %v512_v35, %v348_v40  ;;  %v375_v44 = vsel %vm365_vm10, %v360_v37, 0.0  ;;  %v384_v6 = vsel %vm365_vm10, %v363_v38, 0.0  ;;  %v381_v45 = vsel %vm365_vm10, %v362_v39, 0.0 }
 0x128   :  { %379 = vadd.xlane.f32.xlu1 %v378_v43  ;;  %v387_v46 = vsel %vm365_vm10, %v364_v42, 0.0 }
 0x12a   :  { %376 = vadd.xlane.f32.xlu0 %v375_v44 }
 0x12c   :  { %385 = vadd.xlane.f32.xlu1 %v384_v6 }
 0x12e   :  { %382 = vadd.xlane.f32.xlu0 %v381_v45 }
 0x132   :  { %388 = vadd.xlane.f32.xlu0 %v387_v46 }
 0x133   :  { %614 = shalt.err (!%p611_p4)
}
 0x134   :  { %s615_s6 = scalar_lea.hbm %s856_s4, 128 }
 0x135   :  { %p616_p5 = scmp.ne.s32.totalorder %s856_s4, %s615_s6  ;;  %p619_p6 = scmp.lt.u32.totalorder %s615_s6, %s856_s4 }
 0x137   :  { %p621_p7 = pnand %p619_p6, %p616_p5 }
 0x139   :  { %624 = shalt.err (!%p621_p7)
}
 0x13a   :  { %468 = dma.vmem_to_hbm [thread:$0]  %s466_s2, 128, %s856_s4, [#allocation4]   ;;  %v400_v47 = vsub.s32 %v788_v55, %v702_v7  ;;  %vm430_vm12 = vcmask 1041409   ;;  %vm432_vm13 = vcmask 1042434   ;;  %vm434_vm14 = vcmask 1043459  }
 0x13b   :  { %vm436_vm15 = vcmask 1044484   ;;  %vm438_vm0 = vcmask 1045509   ;;  %vm440_vm1 = vcmask 1046534   ;;  %vm442_vm2 = vcmask 1047559   ;;  %s656_s4 = smov [#allocation5]  }
 0x13c   :  { %s475_s13 = sshll.u32 %s656_s4, 4  ;;  %vm445_vm3 = vcmask 48128   ;;  %s476_s13 = int_to_ptr.vmem [resolvable:$true] %s475_s13 }
 0x13d   :  { %s625_s14 = scalar_lea.vmem %s476_s13, 128  ;;  %p630_p9 = scmp.lt.s32.totalorder %s476_s13, %s476_s13 }
 0x13e   :  { %p626_p8 = scmp.ne.s32.totalorder %s476_s13, %s625_s14  ;;  %p631_p10 = scmp.lt.s32.totalorder %s625_s14, %s625_s14 }
 0x140   :  { %p632_p11 = por %p631_p10, %p630_p9 }
 0x142   :  { %p633_p12 = pnand %p632_p11, %p626_p8 }
 0x1af   :  { %v368_v10 = vpop.xlane.xlu0 %367 }
 0x1b0   :  { %v401_v51 = vrot.slane %v368_v10, %v400_v47 }
 0x1b1   :  { %v371_v48 = vpop.xlane.xlu1 %370 }
 0x1b2   :  { %v405_v49 = vrot.slane %v371_v48, %v400_v47 }
 0x1b3   :  { %v374_v50 = vpop.xlane.xlu0 %373 }
 0x1b4   :  { %v409_v52 = vrot.slane %v374_v50, %v400_v47  ;;  %v431_v53 = vsel %vm430_vm12, %v405_v49, %v401_v51 }
 0x1b5   :  { %v380_v54 = vpop.xlane.xlu1 %379 }
 0x1b6   :  { %v433_v58 = vsel %vm432_vm13, %v409_v52, %v431_v53  ;;  %v417_v60 = vrot.slane %v380_v54, %v400_v47 }
 0x1b7   :  { %v377_v56 = vpop.xlane.xlu0 %376 }
 0x1b8   :  { %v413_v57 = vrot.slane %v377_v56, %v400_v47 }
 0x1b9   :  { %v386_v62 = vpop.xlane.xlu1 %385 }
 0x1ba   :  { %v435_v59 = vsel %vm434_vm14, %v413_v57, %v433_v58  ;;  %v425_v0 = vrot.slane %v386_v62, %v400_v47 }
 0x1bb   :  { %v383_v61 = vpop.xlane.xlu0 %382  ;;  %v437_v55 = vsel %vm436_vm15, %v417_v60, %v435_v59 }
 0x1bc   :  { %v421_v7 = vrot.slane %v383_v61, %v400_v47 }
 0x1be   :  { %v439_v63 = vsel %vm438_vm0, %v421_v7, %v437_v55 }
 0x1bf   :  { %v389_v1 = vpop.xlane.xlu0 %388  ;;  %v441_v3 = vsel %vm440_vm1, %v425_v0, %v439_v63 }
 0x1c0   :  { %v429_v2 = vrot.slane %v389_v1, %v400_v47 }
 0x1c2   :  { %v443_v4 = vsel %vm442_vm2, %v429_v2, %v441_v3 }
 0x1c3   :  { %v446_v5 = vsel %vm445_vm3, %v443_v4, 0.0 }
 0x1c4   :  { %451 = vst [vmem:[#allocation5] sm:$0xff] %v446_v5 }
 0x1c5   :  { %636 = shalt.err (!%p633_p12)
}
 0x1c6   :  { %s637_s17 = scalar_lea.hbm %s857_s5, 128 }
 0x1c7   :  { %p638_p13 = scmp.ne.s32.totalorder %s857_s5, %s637_s17  ;;  %p641_p0 = scmp.lt.u32.totalorder %s637_s17, %s857_s5 }
 0x1c9   :  { %p643_p1 = pnand %p641_p0, %p638_p13 }
 0x1cb   :  { %646 = shalt.err (!%p643_p1)
}
 0x1cc   :  { %478 = dma.vmem_to_hbm [thread:$0]  %s476_s13, 128, %s857_s5, [#allocation6]  }
 0x1cd   :  { %647 = dma.done.wait [#allocation4], 128  }
 0x1ce   :  { %648 = vsyncadd [#allocation4], 4294967168 }
 0x1cf   :  { %649 = dma.done.wait [#allocation6], 128  }
 0x1d0   :  { %650 = vsyncadd [#allocation6], 4294967168 }
 0x1d1   :  { %485 = vsyncpa [#allocation4], 1 }
 0x1d2   :  { %486 = vsyncpa [#allocation6], 1 }

</bundles_post_ra>
